<compile_context>
chip_gen: v5e
topology: v5e:2x2
jax: 0.10.0
libtpu: 0.0.40
codegen_flags: <defaults>
</compile_context>

<pallas_src>
import functools

import jax
import jax.numpy as jnp
from jax.experimental import pallas as pl
from jax.experimental.pallas import tpu as pltpu

# Spatial-tile caps (elements on the lane axis). Blocks are (1, C, TS):
# bf16 input streams: C*TS*2 B each (x2 double-buffer); f32 output: Cout*TS*4 B (x2).
# Worst realistic FCF case (C=256, Cout=512, 3 streams, TS=1024) ~= 8 MiB << 32 MiB.
_CONV_TS_CAP = 2048   # conv1 / FourierUnit conv (1 activation stream)
_ADD_TS_CAP = 1024    # fused conv2 (2-3 activation streams) - conservative for v7x


# ---------------------------------------------------------------------------
# Pallas kernels: 1x1 conv as (Cout, Cin) @ (Cin, spatial_tile) on the MXU.
# ---------------------------------------------------------------------------
def _conv1x1_kernel(x_ref, w_ref, o_ref, *, relu):
    # x_ref: (1, Cin, TS) bf16 | w_ref: (Cout, Cin) bf16 | o_ref: (1, Cout, TS) f32
    acc = jnp.dot(w_ref[...], x_ref[0], preferred_element_type=jnp.float32)
    if relu:
        acc = jnp.maximum(acc, 0.0)
    o_ref[0] = acc.astype(o_ref.dtype)


def _add2_conv1x1_kernel(a_ref, b_ref, w_ref, o_ref):
    s = a_ref[0].astype(jnp.float32) + b_ref[0].astype(jnp.float32)
    o_ref[0] = jnp.dot(w_ref[...], s.astype(w_ref.dtype),
                       preferred_element_type=jnp.float32).astype(o_ref.dtype)


def _add3_conv1x1_kernel(a_ref, b_ref, c_ref, w_ref, o_ref):
    s = (a_ref[0].astype(jnp.float32) + b_ref[0].astype(jnp.float32)
         + c_ref[0].astype(jnp.float32))
    o_ref[0] = jnp.dot(w_ref[...], s.astype(w_ref.dtype),
                       preferred_element_type=jnp.float32).astype(o_ref.dtype)


# ---------------------------------------------------------------------------
# Helpers
# ---------------------------------------------------------------------------
def _pick_tile(total, cap):
    """Largest multiple of 128 that divides `total` and is <= cap, else None."""
    best = None
    t = 128
    while t <= min(total, cap):
        if total % t == 0:
            best = t
        t += 128
    return best


def _cost(n_streams, n, cin, cout, s):
    return pl.CostEstimate(
        flops=2 * n * s * cin * cout,
        transcendentals=0,
        bytes_accessed=n_streams * n * cin * s * 2 + cout * cin * 2 + n * cout * s * 4,
    )


_PARAMS = pltpu.CompilerParams(dimension_semantics=("parallel", "parallel"))


# ---------------------------------------------------------------------------
# Wrappers (channel-major, spatial-flattened: (N, C, S))
# ---------------------------------------------------------------------------
def conv1x1_pallas(x_ncs, w_oc_ic, *, relu=False, ts_cap=_CONV_TS_CAP):
    """1x1 conv (no bias, groups=1): (N, Cin, S) -> (N, Cout, S) f32."""
    n, cin, s = x_ncs.shape
    cout = w_oc_ic.shape[0]
    ts = _pick_tile(s, ts_cap) or s
    return pl.pallas_call(
        functools.partial(_conv1x1_kernel, relu=relu),
        out_shape=jax.ShapeDtypeStruct((n, cout, s), jnp.float32),
        grid=(n, s // ts),
        in_specs=[pl.BlockSpec((1, cin, ts), lambda i, j: (i, 0, j)),
                  pl.BlockSpec((cout, cin), lambda i, j: (0, 0))],
        out_specs=pl.BlockSpec((1, cout, ts), lambda i, j: (i, 0, j)),
        compiler_params=_PARAMS,
        cost_estimate=_cost(1, n, cin, cout, s),
    )(x_ncs.astype(jnp.bfloat16), w_oc_ic.astype(jnp.bfloat16))


def conv2_fused(x_ncs, fu_ncs, w_oc_ic, xs_ncs=None, xs_period_blocks=None, *, ts):
    """conv2(x + fu + xs) fused. xs_ncs=None -> 2-input variant (no LFU).
    xs_period_blocks=nb -> xs has spatial extent nb*ts; output block j reads
    xs block (j % nb), i.e. the H-period of torch's repeat(1,1,2,2)."""
    n, cin, s = x_ncs.shape
    cout = w_oc_ic.shape[0]
    act_spec = pl.BlockSpec((1, cin, ts), lambda i, j: (i, 0, j))
    in_specs = [act_spec, act_spec]
    args = [x_ncs.astype(jnp.bfloat16), fu_ncs.astype(jnp.bfloat16)]
    if xs_ncs is None:
        kernel = _add2_conv1x1_kernel
        n_streams = 2
    else:
        kernel = _add3_conv1x1_kernel
        n_streams = 3
        if xs_period_blocks is None:
            in_specs.append(act_spec)
        elif xs_period_blocks == 1:
            in_specs.append(pl.BlockSpec((1, cin, ts), lambda i, j: (i, 0, 0)))
        else:
            nb = int(xs_period_blocks)
            in_specs.append(pl.BlockSpec((1, cin, ts), lambda i, j: (i, 0, j % nb)))
        args.append(xs_ncs.astype(jnp.bfloat16))
    in_specs.append(pl.BlockSpec((cout, cin), lambda i, j: (0, 0)))
    args.append(w_oc_ic.astype(jnp.bfloat16))
    return pl.pallas_call(
        kernel,
        out_shape=jax.ShapeDtypeStruct((n, cout, s), jnp.float32),
        grid=(n, s // ts),
        in_specs=in_specs,
        out_specs=pl.BlockSpec((1, cout, ts), lambda i, j: (i, 0, j)),
        compiler_params=_PARAMS,
        cost_estimate=_cost(n_streams, n, cin, cout, s),
    )(*args)


# ---------------------------------------------------------------------------
# FourierUnit (default config: groups=1, no SE, no pos-enc, 2D FFT, ortho)
# ---------------------------------------------------------------------------
def fourier_unit(x_ncs, h, w, conv_w):
    """x_ncs: (N, C, H*W) f32; conv_w: (2C, 2C). Returns (N, C, H*W) f32."""
    n, c, s = x_ncs.shape
    x_img = x_ncs.reshape(n, c, h, w)
    # TODO(synk): FFT has no Pallas TPU primitive; rfft2/irfft2 run in plain JAX.
    ffted = jnp.fft.rfft2(x_img, axes=(-2, -1), norm="ortho")      # (N, C, H, Wf)
    wf = ffted.shape[-1]
    # stack(real,imag) on dim=-1 + permute(0,1,4,2,3).view == stack axis=2 + reshape
    stacked = jnp.stack((ffted.real, ffted.imag), axis=2).reshape(n, 2 * c, h, wf)
    sf = h * wf
    conv_out = conv1x1_pallas(stacked.reshape(n, 2 * c, sf).astype(jnp.float32),
                              conv_w, relu=True)                   # (N, 2C, SF) f32
    conv_out = conv_out.reshape(n, c, 2, h, wf)
    z = jax.lax.complex(conv_out[:, :, 0], conv_out[:, :, 1])      # (N, C, H, Wf)
    out = jnp.fft.irfft2(z, s=(h, w), axes=(-2, -1), norm="ortho")
    return out.reshape(n, c, s).astype(jnp.float32)


# ---------------------------------------------------------------------------
# SpectralTransform forward
# ---------------------------------------------------------------------------
def spectral_transform(x, params, *, stride=1, enable_lfu=True):
    n, c_in, h, w = x.shape
    if stride == 2:
        # TODO(synk): 2x2 avg-pool is a strided reduction that does not map onto the
        # flattened-spatial 1x1-conv kernels; kept as an XLA reshape+mean.
        x = x.reshape(n, c_in, h // 2, 2, w // 2, 2).mean(axis=(3, 5))
        h, w = h // 2, w // 2
    s = h * w

    # conv1: 1x1 conv + ReLU (Pallas, spatial-on-lanes)
    x1 = conv1x1_pallas(x.reshape(n, c_in, s), params["conv1_w"], relu=True)  # (N,C,S)
    c = x1.shape[1]

    # global Fourier unit
    fu_out = fourier_unit(x1, h, w, params["fu_w"])                           # (N,C,S)

    if enable_lfu:
        h2, w2 = h // 2, w // 2
        c4 = c // 4
        x_img = x1.reshape(n, c, h, w)
        xs = x_img[:, :c4]                                        # (N, C/4, H,   W)
        xs = jnp.concatenate(jnp.split(xs, 2, axis=2), axis=1)    # (N, C/2, H/2, W)
        xs = jnp.concatenate(jnp.split(xs, 2, axis=3), axis=1)    # (N, C,   H/2, W/2)
        xs = fourier_unit(xs.reshape(n, c, h2 * w2), h2, w2, params["lfu_w"])
        xs_img = xs.reshape(n, c, h2, w2)

        ts = _pick_tile(s, min(_ADD_TS_CAP, s // 2))
        if ts is not None and ts % w == 0 and h2 % (ts // w) == 0:
            # Replicate xs only along W (quarter -> half size); the H-period of
            # torch's repeat(1,1,2,2) is handled by the xs BlockSpec index_map.
            xs_half = jnp.concatenate([xs_img, xs_img], axis=-1).reshape(n, c, s // 2)
            nb = (s // 2) // ts
            out = conv2_fused(x1, fu_out, params["conv2_w"],
                              xs_ncs=xs_half, xs_period_blocks=nb, ts=ts)
        else:
            # Fallback for awkward shapes: materialise the full 2x2 repeat.
            ts = _pick_tile(s, _ADD_TS_CAP) or s
            xs_full = jnp.tile(xs_img, (1, 1, 2, 2)).reshape(n, c, s)
            out = conv2_fused(x1, fu_out, params["conv2_w"],
                              xs_ncs=xs_full, xs_period_blocks=None, ts=ts)
    else:
        ts = _pick_tile(s, _ADD_TS_CAP) or s
        out = conv2_fused(x1, fu_out, params["conv2_w"], xs_ncs=None, ts=ts)

    return out.reshape(n, -1, h, w)


# ---------------------------------------------------------------------------
# Deterministic parameter init (weights stored as (Cout, Cin), like torch's
# (Cout, Cin, 1, 1) squeezed)
# ---------------------------------------------------------------------------
def init_params(key, in_channels, out_channels):
    half = out_channels // 2
    k1, k2, k3, k4 = jax.random.split(key, 4)
    return {
        "conv1_w": 0.1 * jax.random.normal(k1, (half, in_channels), jnp.float32),
        "fu_w":    0.1 * jax.random.normal(k2, (2 * half, 2 * half), jnp.float32),
        "lfu_w":   0.1 * jax.random.normal(k3, (2 * half, 2 * half), jnp.float32),
        "conv2_w": 0.1 * jax.random.normal(k4, (out_channels, half), jnp.float32),
    }


if __name__ == "__main__":
    key = jax.random.PRNGKey(0)
    kx, kp = jax.random.split(key)

    in_channels, out_channels = 8, 8
    N, H, W = 2, 16, 16
    x = jax.random.normal(kx, (N, in_channels, H, W), jnp.float32)
    params = init_params(kp, in_channels, out_channels)

    # main config: stride=1, LFU enabled (3-stream fused conv2 with index_map wrap)
    fwd = jax.jit(functools.partial(spectral_transform, stride=1, enable_lfu=True))
    out = jax.block_until_ready(fwd(x, params))
    assert out.shape == (N, out_channels, H, W), out.shape
    assert out.dtype == jnp.float32
    assert bool(jnp.all(jnp.isfinite(out)))

    # LFU-disabled config exercises the 2-stream kernel (no zeros DMA)
    fwd2 = jax.jit(functools.partial(spectral_transform, stride=1, enable_lfu=False))
    out2 = jax.block_until_ready(fwd2(x, params))
    assert out2.shape == (N, out_channels, H, W), out2.shape
    assert bool(jnp.all(jnp.isfinite(out2)))

    print("KERNEL_OK")
</pallas_src>

<mosaic_0001>
module attributes {stable_mosaic.version = 11 : i64} {
  func.func @_conv1x1_kernel(%arg0: i32, %arg1: i32, %arg2: memref<1x8x256xbf16, #tpu.memory_space<vmem>>, %arg3: memref<4x8xbf16, #tpu.memory_space<vmem>>, %arg4: memref<1x4x256xf32, #tpu.memory_space<vmem>>) attributes {dimension_semantics = [#tpu.dimension_semantics<parallel>, #tpu.dimension_semantics<parallel>], iteration_bounds = array<i64: 2, 1>, scalar_prefetch = 0 : i64, scratch_operands = 0 : i64, tpu.core_type = #tpu.core_type<tc>, window_params = [{transform_indices = @transform_0, window_bounds = array<i64: 1, 8, 256>}, {pipeline_mode = #tpu.pipeline_mode<synchronous>, transform_indices = @transform_1, window_bounds = array<i64: 4, 8>}, {transform_indices = @transform_2, window_bounds = array<i64: 1, 4, 256>}]} {
    %c0 = arith.constant 0 : index
    %c0_0 = arith.constant 0 : index
    %0 = vector.load %arg3[%c0, %c0_0] : memref<4x8xbf16, #tpu.memory_space<vmem>>, vector<4x8xbf16>
    %c0_1 = arith.constant 0 : index
    %c0_2 = arith.constant 0 : index
    %c0_3 = arith.constant 0 : index
    %1 = vector.load %arg2[%c0_1, %c0_2, %c0_3] : memref<1x8x256xbf16, #tpu.memory_space<vmem>>, vector<1x8x256xbf16>
    %2 = vector.shape_cast %1 : vector<1x8x256xbf16> to vector<8x256xbf16>
    %cst = arith.constant dense<0.000000e+00> : vector<4x256xf32>
    %3 = tpu.matmul %0, %2, %cst {dimension_numbers = #tpu.dot_dimension_numbers<[1], [0], [0], [1], [0, 0, 1, 1], [], []>} : vector<4x8xbf16>, vector<8x256xbf16>, vector<4x256xf32> -> vector<4x256xf32>
    %cst_4 = arith.constant 0.000000e+00 : f32
    %4 = vector.broadcast %cst_4 : f32 to vector<4x256xf32>
    %5 = arith.maximumf %3, %4 : vector<4x256xf32>
    %c0_5 = arith.constant 0 : index
    %c0_6 = arith.constant 0 : index
    %c0_7 = arith.constant 0 : index
    %6 = vector.load %arg4[%c0_5, %c0_6, %c0_7] : memref<1x4x256xf32, #tpu.memory_space<vmem>>, vector<1x4x256xf32>
    %7 = vector.shape_cast %6 : vector<1x4x256xf32> to vector<4x256xf32>
    %8 = vector.shape_cast %5 : vector<4x256xf32> to vector<1x4x256xf32>
    tpu.vector_store %arg4[%c0_5, %c0_6, %c0_7], %8 {strides = array<i32>} : memref<1x4x256xf32, #tpu.memory_space<vmem>>, vector<1x4x256xf32>,
    return
  }
  func.func @transform_0(%arg0: i32, %arg1: i32) -> (i32, i32, i32) {
    %c0_i32 = arith.constant 0 : i32
    %c0_i32_0 = arith.constant 0 : i32
    return %arg0, %c0_i32, %arg1 : i32, i32, i32
  }
  func.func @transform_1(%arg0: i32, %arg1: i32) -> (i32, i32) {
    %c0_i32 = arith.constant 0 : i32
    %c0_i32_0 = arith.constant 0 : i32
    %c0_i32_1 = arith.constant 0 : i32
    return %c0_i32, %c0_i32_0 : i32, i32
  }
  func.func @transform_2(%arg0: i32, %arg1: i32) -> (i32, i32, i32) {
    %c0_i32 = arith.constant 0 : i32
    %c0_i32_0 = arith.constant 0 : i32
    return %arg0, %c0_i32, %arg1 : i32, i32, i32
  }
}

module attributes {stable_mosaic.version = 11 : i64} {
  func.func @_conv1x1_kernel(%arg0: i32, %arg1: i32, %arg2: memref<1x8x40xbf16, #tpu.memory_space<vmem>>, %arg3: memref<8x8xbf16, #tpu.memory_space<vmem>>, %arg4: memref<1x8x40xf32, #tpu.memory_space<vmem>>) attributes {dimension_semantics = [#tpu.dimension_semantics<parallel>, #tpu.dimension_semantics<parallel>], iteration_bounds = array<i64: 2, 1>, scalar_prefetch = 0 : i64, scratch_operands = 0 : i64, tpu.core_type = #tpu.core_type<tc>, window_params = [{transform_indices = @transform_0, window_bounds = array<i64: 1, 8, 40>}, {pipeline_mode = #tpu.pipeline_mode<synchronous>, transform_indices = @transform_1, window_bounds = array<i64: 8, 8>}, {transform_indices = @transform_2, window_bounds = array<i64: 1, 8, 40>}]} {
    %c0 = arith.constant 0 : index
    %c0_0 = arith.constant 0 : index
    %0 = vector.load %arg3[%c0, %c0_0] : memref<8x8xbf16, #tpu.memory_space<vmem>>, vector<8x8xbf16>
    %c0_1 = arith.constant 0 : index
    %c0_2 = arith.constant 0 : index
    %c0_3 = arith.constant 0 : index
    %1 = vector.load %arg2[%c0_1, %c0_2, %c0_3] : memref<1x8x40xbf16, #tpu.memory_space<vmem>>, vector<1x8x40xbf16>
    %2 = vector.shape_cast %1 : vector<1x8x40xbf16> to vector<8x40xbf16>
    %cst = arith.constant dense<0.000000e+00> : vector<8x40xf32>
    %3 = tpu.matmul %0, %2, %cst {dimension_numbers = #tpu.dot_dimension_numbers<[1], [0], [0], [1], [0, 0, 1, 1], [], []>} : vector<8x8xbf16>, vector<8x40xbf16>, vector<8x40xf32> -> vector<8x40xf32>
    %cst_4 = arith.constant 0.000000e+00 : f32
    %4 = vector.broadcast %cst_4 : f32 to vector<8x40xf32>
    %5 = arith.maximumf %3, %4 : vector<8x40xf32>
    %c0_5 = arith.constant 0 : index
    %c0_6 = arith.constant 0 : index
    %c0_7 = arith.constant 0 : index
    %6 = vector.load %arg4[%c0_5, %c0_6, %c0_7] : memref<1x8x40xf32, #tpu.memory_space<vmem>>, vector<1x8x40xf32>
    %7 = vector.shape_cast %6 : vector<1x8x40xf32> to vector<8x40xf32>
    %8 = vector.shape_cast %5 : vector<8x40xf32> to vector<1x8x40xf32>
    tpu.vector_store %arg4[%c0_5, %c0_6, %c0_7], %8 {strides = array<i32>} : memref<1x8x40xf32, #tpu.memory_space<vmem>>, vector<1x8x40xf32>,
    return
  }
  func.func @transform_0(%arg0: i32, %arg1: i32) -> (i32, i32, i32) {
    %c0_i32 = arith.constant 0 : i32
    %c0_i32_0 = arith.constant 0 : i32
    return %arg0, %c0_i32, %arg1 : i32, i32, i32
  }
  func.func @transform_1(%arg0: i32, %arg1: i32) -> (i32, i32) {
    %c0_i32 = arith.constant 0 : i32
    %c0_i32_0 = arith.constant 0 : i32
    %c0_i32_1 = arith.constant 0 : i32
    return %c0_i32, %c0_i32_0 : i32, i32
  }
  func.func @transform_2(%arg0: i32, %arg1: i32) -> (i32, i32, i32) {
    %c0_i32 = arith.constant 0 : i32
    %c0_i32_0 = arith.constant 0 : i32
    return %arg0, %c0_i32, %arg1 : i32, i32, i32
  }
}

module attributes {stable_mosaic.version = 11 : i64} {
  func.func @_conv1x1_kernel(%arg0: i32, %arg1: i32, %arg2: memref<1x8x144xbf16, #tpu.memory_space<vmem>>, %arg3: memref<8x8xbf16, #tpu.memory_space<vmem>>, %arg4: memref<1x8x144xf32, #tpu.memory_space<vmem>>) attributes {dimension_semantics = [#tpu.dimension_semantics<parallel>, #tpu.dimension_semantics<parallel>], iteration_bounds = array<i64: 2, 1>, scalar_prefetch = 0 : i64, scratch_operands = 0 : i64, tpu.core_type = #tpu.core_type<tc>, window_params = [{transform_indices = @transform_0, window_bounds = array<i64: 1, 8, 144>}, {pipeline_mode = #tpu.pipeline_mode<synchronous>, transform_indices = @transform_1, window_bounds = array<i64: 8, 8>}, {transform_indices = @transform_2, window_bounds = array<i64: 1, 8, 144>}]} {
    %c0 = arith.constant 0 : index
    %c0_0 = arith.constant 0 : index
    %0 = vector.load %arg3[%c0, %c0_0] : memref<8x8xbf16, #tpu.memory_space<vmem>>, vector<8x8xbf16>
    %c0_1 = arith.constant 0 : index
    %c0_2 = arith.constant 0 : index
    %c0_3 = arith.constant 0 : index
    %1 = vector.load %arg2[%c0_1, %c0_2, %c0_3] : memref<1x8x144xbf16, #tpu.memory_space<vmem>>, vector<1x8x144xbf16>
    %2 = vector.shape_cast %1 : vector<1x8x144xbf16> to vector<8x144xbf16>
    %cst = arith.constant dense<0.000000e+00> : vector<8x144xf32>
    %3 = tpu.matmul %0, %2, %cst {dimension_numbers = #tpu.dot_dimension_numbers<[1], [0], [0], [1], [0, 0, 1, 1], [], []>} : vector<8x8xbf16>, vector<8x144xbf16>, vector<8x144xf32> -> vector<8x144xf32>
    %cst_4 = arith.constant 0.000000e+00 : f32
    %4 = vector.broadcast %cst_4 : f32 to vector<8x144xf32>
    %5 = arith.maximumf %3, %4 : vector<8x144xf32>
    %c0_5 = arith.constant 0 : index
    %c0_6 = arith.constant 0 : index
    %c0_7 = arith.constant 0 : index
    %6 = vector.load %arg4[%c0_5, %c0_6, %c0_7] : memref<1x8x144xf32, #tpu.memory_space<vmem>>, vector<1x8x144xf32>
    %7 = vector.shape_cast %6 : vector<1x8x144xf32> to vector<8x144xf32>
    %8 = vector.shape_cast %5 : vector<8x144xf32> to vector<1x8x144xf32>
    tpu.vector_store %arg4[%c0_5, %c0_6, %c0_7], %8 {strides = array<i32>} : memref<1x8x144xf32, #tpu.memory_space<vmem>>, vector<1x8x144xf32>,
    return
  }
  func.func @transform_0(%arg0: i32, %arg1: i32) -> (i32, i32, i32) {
    %c0_i32 = arith.constant 0 : i32
    %c0_i32_0 = arith.constant 0 : i32
    return %arg0, %c0_i32, %arg1 : i32, i32, i32
  }
  func.func @transform_1(%arg0: i32, %arg1: i32) -> (i32, i32) {
    %c0_i32 = arith.constant 0 : i32
    %c0_i32_0 = arith.constant 0 : i32
    %c0_i32_1 = arith.constant 0 : i32
    return %c0_i32, %c0_i32_0 : i32, i32
  }
  func.func @transform_2(%arg0: i32, %arg1: i32) -> (i32, i32, i32) {
    %c0_i32 = arith.constant 0 : i32
    %c0_i32_0 = arith.constant 0 : i32
    return %arg0, %c0_i32, %arg1 : i32, i32, i32
  }
}

module attributes {stable_mosaic.version = 11 : i64} {
  func.func @_add3_conv1x1_kernel(%arg0: i32, %arg1: i32, %arg2: memref<1x4x128xbf16, #tpu.memory_space<vmem>>, %arg3: memref<1x4x128xbf16, #tpu.memory_space<vmem>>, %arg4: memref<1x4x128xbf16, #tpu.memory_space<vmem>>, %arg5: memref<8x4xbf16, #tpu.memory_space<vmem>>, %arg6: memref<1x8x128xf32, #tpu.memory_space<vmem>>) attributes {dimension_semantics = [#tpu.dimension_semantics<parallel>, #tpu.dimension_semantics<parallel>], iteration_bounds = array<i64: 2, 2>, scalar_prefetch = 0 : i64, scratch_operands = 0 : i64, tpu.core_type = #tpu.core_type<tc>, window_params = [{transform_indices = @transform_0, window_bounds = array<i64: 1, 4, 128>}, {transform_indices = @transform_1, window_bounds = array<i64: 1, 4, 128>}, {transform_indices = @transform_2, window_bounds = array<i64: 1, 4, 128>}, {pipeline_mode = #tpu.pipeline_mode<synchronous>, transform_indices = @transform_3, window_bounds = array<i64: 8, 4>}, {transform_indices = @transform_4, window_bounds = array<i64: 1, 8, 128>}]} {
    %c0 = arith.constant 0 : index
    %c0_0 = arith.constant 0 : index
    %c0_1 = arith.constant 0 : index
    %0 = vector.load %arg2[%c0, %c0_0, %c0_1] : memref<1x4x128xbf16, #tpu.memory_space<vmem>>, vector<1x4x128xbf16>
    %1 = vector.shape_cast %0 : vector<1x4x128xbf16> to vector<4x128xbf16>
    %2 = arith.extf %1 : vector<4x128xbf16> to vector<4x128xf32>
    %c0_2 = arith.constant 0 : index
    %c0_3 = arith.constant 0 : index
    %c0_4 = arith.constant 0 : index
    %3 = vector.load %arg3[%c0_2, %c0_3, %c0_4] : memref<1x4x128xbf16, #tpu.memory_space<vmem>>, vector<1x4x128xbf16>
    %4 = vector.shape_cast %3 : vector<1x4x128xbf16> to vector<4x128xbf16>
    %5 = arith.extf %4 : vector<4x128xbf16> to vector<4x128xf32>
    %6 = arith.addf %2, %5 : vector<4x128xf32>
    %c0_5 = arith.constant 0 : index
    %c0_6 = arith.constant 0 : index
    %c0_7 = arith.constant 0 : index
    %7 = vector.load %arg4[%c0_5, %c0_6, %c0_7] : memref<1x4x128xbf16, #tpu.memory_space<vmem>>, vector<1x4x128xbf16>
    %8 = vector.shape_cast %7 : vector<1x4x128xbf16> to vector<4x128xbf16>
    %9 = arith.extf %8 : vector<4x128xbf16> to vector<4x128xf32>
    %10 = arith.addf %6, %9 : vector<4x128xf32>
    %c0_8 = arith.constant 0 : index
    %c0_9 = arith.constant 0 : index
    %11 = vector.load %arg5[%c0_8, %c0_9] : memref<8x4xbf16, #tpu.memory_space<vmem>>, vector<8x4xbf16>
    %12 = arith.truncf %10 : vector<4x128xf32> to vector<4x128xbf16>
    %cst = arith.constant dense<0.000000e+00> : vector<8x128xf32>
    %13 = tpu.matmul %11, %12, %cst {dimension_numbers = #tpu.dot_dimension_numbers<[1], [0], [0], [1], [0, 0, 1, 1], [], []>} : vector<8x4xbf16>, vector<4x128xbf16>, vector<8x128xf32> -> vector<8x128xf32>
    %c0_10 = arith.constant 0 : index
    %c0_11 = arith.constant 0 : index
    %c0_12 = arith.constant 0 : index
    %14 = vector.load %arg6[%c0_10, %c0_11, %c0_12] : memref<1x8x128xf32, #tpu.memory_space<vmem>>, vector<1x8x128xf32>
    %15 = vector.shape_cast %14 : vector<1x8x128xf32> to vector<8x128xf32>
    %16 = vector.shape_cast %13 : vector<8x128xf32> to vector<1x8x128xf32>
    tpu.vector_store %arg6[%c0_10, %c0_11, %c0_12], %16 {strides = array<i32>} : memref<1x8x128xf32, #tpu.memory_space<vmem>>, vector<1x8x128xf32>,
    return
  }
  func.func @transform_0(%arg0: i32, %arg1: i32) -> (i32, i32, i32) {
    %c0_i32 = arith.constant 0 : i32
    %c0_i32_0 = arith.constant 0 : i32
    return %arg0, %c0_i32, %arg1 : i32, i32, i32
  }
  func.func @transform_1(%arg0: i32, %arg1: i32) -> (i32, i32, i32) {
    %c0_i32 = arith.constant 0 : i32
    %c0_i32_0 = arith.constant 0 : i32
    return %arg0, %c0_i32, %arg1 : i32, i32, i32
  }
  func.func @transform_2(%arg0: i32, %arg1: i32) -> (i32, i32, i32) {
    %c0_i32 = arith.constant 0 : i32
    %c0_i32_0 = arith.constant 0 : i32
    %c0_i32_1 = arith.constant 0 : i32
    return %arg0, %c0_i32, %c0_i32_0 : i32, i32, i32
  }
  func.func @transform_3(%arg0: i32, %arg1: i32) -> (i32, i32) {
    %c0_i32 = arith.constant 0 : i32
    %c0_i32_0 = arith.constant 0 : i32
    %c0_i32_1 = arith.constant 0 : i32
    return %c0_i32, %c0_i32_0 : i32, i32
  }
  func.func @transform_4(%arg0: i32, %arg1: i32) -> (i32, i32, i32) {
    %c0_i32 = arith.constant 0 : i32
    %c0_i32_0 = arith.constant 0 : i32
    return %arg0, %c0_i32, %arg1 : i32, i32, i32
  }
}

</mosaic_0001>

<bundles_post_ra>
// kernel: spectral_transform.4
= control target key start
LH: loop header
LB: loop body
LE: loop exit
PB: predicated region body
PF: predicated region fallthrough
CT: control target
= control target key end

     0   :  { %s401_s9 = smov 0   ;;  %s403_s10 = smov 0   ;;  %s440_s0 = inlined_call_operand.vmem [shape: bf16[2,8,256], index: 0, kind: input, shape index: {}]   ;;  %s441_s1 = inlined_call_operand.vmem [shape: bf16[4,8], index: 1, kind: input, shape index: {}]   ;;  %s442_s2 = inlined_call_operand.vmem [shape: f32[2,4,256], index: 2, kind: output, shape index: {}]  }
   0x1   :  { %s405_s11 = smov 0  }
   0x2 LB: > { %s24_s12 = sadd.s32 1, %s380_s10  ;;  %p327_p0 = scmp.ge.s32.totalorder %s384_s11, 1  ;;  %s384_s11 = sphi %s405_s11, %s12_s11   ;;  %s380_s10 = sphi %s403_s10, %s444_s10   ;;  %s376_s9 = sphi %s401_s9, %s443_s9  }
   0x3   : > { %p26_p1 = scmp.ge.s32.totalorder %s24_s12, 2  ;;  %p133_p2 = scmp.lt.s32.totalorder %s384_s11, 3 }
   0x5   : > { %s446_s12 = smov (%p26_p1, %s24_s12), 0  ;;  %p134_p3 = pnand %p327_p0, %p133_p2 }
   0x6   : > { %p164_p4 = scmp.lt.s32.totalorder (!%p134_p3), %s376_s9, 1 }
   0x7   : > { %137 = sbr.rel (%p134_p3) target bundleno = 158 (0x9e), region = 28 }
   0xc   : > { %s448_s9 = smov (!%p164_p4, %s376_s9), 1  ;;  %vm195_vm0 = vcmask 1043456   ;;  %v184_v7 = vld [vmem:[%s441_s1] sm:$0x3]  ;;  %vm191_vm1 = vcmask 64512  }
   0xd   : > { %s336_s13 = sshll.u32 %s448_s9, 3 }
   0xe   : > { %s171_s16 = scalar_lea.vmem %s440_s0, %s336_s13  ;;  %s181_s21 = scalar_lea.vmem %s442_s2, %s336_s13 }
   0xf   : > { %v185_v0 = vld [vmem:[%s171_s16] sm:$0xff] }
  0x10   : > { %v187_v1 = vunpack.c.l.b16 %v185_v0  ;;  %v188_v2 = vunpack.c.h.b16 %v185_v0 }
  0x12   : > { %v189_v3 = vpack.c.b16 %v187_v1, %v187_v1  ;;  %v190_v4 = vpack.c.b16 %v188_v2, %v188_v2 }
  0x14   : > { %v197_v5 = vsel %vm195_vm0, %v189_v3, 0  ;;  %v200_v6 = vsel %vm195_vm0, %v190_v4, 0 }
  0x15   : > { %209 = vmatpush.bf16.msra.mxu0 %v197_v5  ;;  %222 = vmatpush.bf16.msra.mxu1 %v200_v6 }
  0x18   : > { %332 = vmatmul.msk.bf16.vlgmr.msra.gmra.mxu0 %vm191_vm1, %v184_v7  ;;  %333 = vmatmul.msk.bf16.vlgmr.msra.gmra.mxu1 %vm191_vm1, %v184_v7 }
  0x95   : > { %v211_v8 = vpop.f32.mrf.mxu0  ;;  %v224_v9 = vpop.f32.mrf.mxu1 }
  0x96   : > { %v229_v10 = vmax.f32 %v224_v9, 0.0  ;;  %v228_v11 = vmax.f32 %v211_v8, 0.0 }
  0x98   : > { %v232_v12 = vrot.slane %v229_v10, 4 }
  0x9a   : > { %v233_v13 = vsel %vm195_vm0, %v228_v11, %v232_v12 }
  0x9b   : > { %235 = vst [vmem:[%s181_s21] sm:$0xff] %v233_v13 }
  0x9d   : > { %v213_v14 = vpop.f32.mrf.mxu0  ;;  %v226_v15 = vpop.f32.mrf.mxu1 }
  0x9e PF: > { %s12_s11 = sadd.s32 1, %s384_s11   ;;  %s443_s9 = smov %s380_s10 }
  0x9f   : > { %p9_p5 = scmp.ge.s32.totalorder %s12_s11, 4   ;;  %s444_s10 = smov %s446_s12 }
  0xa1   :  { %11 = sbr.rel (!%p9_p5) target bundleno = 2 (0x2), region = 58 }

// kernel: reverse.3
= control target key start
LH: loop header
LB: loop body
LE: loop exit
PB: predicated region body
PF: predicated region fallthrough
CT: control target
= control target key end

     0   :  { %v79_v8 = vld [vmem:[#allocation1 + $0x38] sm:$0xf]  ;;  %v87_v9 = vld [vmem:[#allocation1 + $0x30] sm:$0xf]  ;;  %v95_v10 = vld [vmem:[#allocation1 + $0x28] sm:$0xf]  ;;  %v144_v16 = vlaneseq  ;;  %s447_s0 = inlined_call_operand.vmem [shape: f32[2,4,8,3], index: 0, kind: input, shape index: {}]   ;;  %s448_s1 = inlined_call_operand.vmem [shape: f32[2,4,8,3], index: 1, kind: output, shape index: {}]  }
   0x1   :  { %v19_v0 = vld [vmem:[%s447_s0] sm:$0xf]  ;;  %v21_v1 = vld [vmem:[%s447_s0 + $0x4] sm:$0xf]  ;;  %v23_v2 = vld [vmem:[%s447_s0 + $0x8] sm:$0xf] }
   0x2   :  { %20 = vst [vmem:[#allocation1 + $0x4] sm:$0xf] %v19_v0  ;;  %v25_v3 = vld [vmem:[%s447_s0 + $0xc] sm:$0xf]  ;;  %v27_v4 = vld [vmem:[%s447_s0 + $0x10] sm:$0xf] }
   0x3   :  { %22 = vst [vmem:[#allocation1 + $0xc] sm:$0xf] %v21_v1  ;;  %v29_v5 = vld [vmem:[%s447_s0 + $0x14] sm:$0xf]  ;;  %v31_v6 = vld [vmem:[%s447_s0 + $0x18] sm:$0xf] }
   0x4   :  { %24 = vst [vmem:[#allocation1 + $0x14] sm:$0xf] %v23_v2  ;;  %v33_v7 = vld [vmem:[%s447_s0 + $0x1c] sm:$0xf]  ;;  %v103_v11 = vld [vmem:[#allocation1 + $0x20] sm:$0xf] }
   0x5   :  { %26 = vst [vmem:[#allocation1 + $0x1c] sm:$0xf] %v25_v3  ;;  %v111_v18 = vld [vmem:[#allocation1 + $0x18] sm:$0xf]  ;;  %v119_v20 = vld [vmem:[#allocation1 + $0x10] sm:$0xf] }
   0x6   :  { %28 = vst [vmem:[#allocation1 + $0x24] sm:$0xf] %v27_v4  ;;  %v127_v21 = vld [vmem:[#allocation1 + $0x8] sm:$0xf]  ;;  %v145_v23 = vshrl.u32 %v144_v16, 7 }
   0x7   :  { %30 = vst [vmem:[#allocation1 + $0x2c] sm:$0xf] %v29_v5  ;;  %v134_v28 = vld [vmem:[#allocation1] sm:$0xf] }
   0x8   :  { %32 = vst [vmem:[#allocation1 + $0x34] sm:$0xf] %v31_v6  ;;  %vm146_vm0 = vcmp.lt.s32.totalorder %v145_v23, 3 }
   0x9   :  { %34 = vst [vmem:[#allocation1 + $0x3c] sm:$0xf] %v33_v7  ;;  %v131_v24 = vld [vmem:[#allocation1 + $0x4] sm:$0xf] }
   0xa   :  { %81 = vst [vmem:[#allocation0 + $0x70] sm:$0xf] %v79_v8  ;;  %v123_v22 = vld [vmem:[#allocation1 + $0xc] sm:$0xf] }
   0xb   :  { %89 = vst [vmem:[#allocation0 + $0x60] sm:$0xf] %v87_v9  ;;  %v115_v19 = vld [vmem:[#allocation1 + $0x14] sm:$0xf] }
   0xc   :  { %97 = vst [vmem:[#allocation0 + $0x50] sm:$0xf] %v95_v10  ;;  %v107_v15 = vld [vmem:[#allocation1 + $0x1c] sm:$0xf] }
   0xd   :  { %v99_v12 = vld [vmem:[#allocation1 + $0x24] sm:$0xf]  ;;  %105 = vst [vmem:[#allocation0 + $0x40] sm:$0xf] %v103_v11 }
   0xe   :  { %v91_v13 = vld [vmem:[#allocation1 + $0x2c] sm:$0xf]  ;;  %101 = vst [vmem:[#allocation0 + $0x48] sm:$0xf] %v99_v12 }
   0xf   :  { %v83_v14 = vld [vmem:[#allocation1 + $0x34] sm:$0xf]  ;;  %93 = vst [vmem:[#allocation0 + $0x58] sm:$0xf] %v91_v13 }
  0x10   :  { %v75_v17 = vld [vmem:[#allocation1 + $0x3c] sm:$0xf]  ;;  %85 = vst [vmem:[#allocation0 + $0x68] sm:$0xf] %v83_v14 }
  0x11   :  { %77 = vst [vmem:[#allocation0 + $0x78] sm:$0xf] %v75_v17  ;;  %v235_v52 = vld [vmem:[#allocation0 + $0x77] ss:$-1 sm:$0xff] }
  0x12   :  { %109 = vst [vmem:[#allocation0 + $0x38] sm:$0xf] %v107_v15  ;;  %v221_v46 = vld [vmem:[#allocation0 + $0x67] ss:$-1 sm:$0xff]  ;;  %v236_v56 = vrot.slane %v235_v52, 5 }
  0x13   :  { %113 = vst [vmem:[#allocation0 + $0x30] sm:$0xf] %v111_v18  ;;  %v207_v27 = vld [vmem:[#allocation0 + $0x57] ss:$-1 sm:$0xff]  ;;  %v222_v53 = vrot.slane %v221_v46, 5 }
  0x14   :  { %117 = vst [vmem:[#allocation0 + $0x28] sm:$0xf] %v115_v19  ;;  %v193_v25 = vld [vmem:[#allocation0 + $0x47] ss:$-1 sm:$0xff]  ;;  %v208_v31 = vrot.slane %v207_v27, 5 }
  0x15   :  { %121 = vst [vmem:[#allocation0 + $0x20] sm:$0xf] %v119_v20  ;;  %v198_v26 = vld [vmem:[#allocation0 + $0x4f] ss:$-1 sm:$0xff]  ;;  %v194_v29 = vrot.slane %v193_v25, 5 }
  0x16   :  { %125 = vst [vmem:[#allocation0 + $0x18] sm:$0xf] %v123_v22  ;;  %v199_v30 = vrot.slane %v198_v26, 5  ;;  %v212_v43 = vld [vmem:[#allocation0 + $0x5f] ss:$-1 sm:$0xff] }
  0x17   :  { %129 = vst [vmem:[#allocation0 + $0x10] sm:$0xf] %v127_v21  ;;  %v226_v49 = vld [vmem:[#allocation0 + $0x6f] ss:$-1 sm:$0xff]  ;;  %v213_v51 = vrot.slane %v212_v43, 5 }
  0x18   :  { %133 = vst [vmem:[#allocation0 + $0x8] sm:$0xf] %v131_v24  ;;  %v240_v54 = vld [vmem:[#allocation0 + $0x7f] ss:$-1 sm:$0xff]  ;;  %v227_v55 = vrot.slane %v226_v49, 5 }
  0x19   :  { %135 = vst [vmem:[#allocation0] sm:$0xf] %v134_v28  ;;  %v184_v32 = vld [vmem:[#allocation0 + $0x3f] ss:$-1 sm:$0xff]  ;;  %v241_v57 = vrot.slane %v240_v54, 5 }
  0x1a   :  { %v179_v33 = vld [vmem:[#allocation0 + $0x37] ss:$-1 sm:$0xff]  ;;  %v185_v34 = vrot.slane %v184_v32, 5  ;;  %195 = vst [vmem:[#allocation2 + $0x20] sm:$0xff] %v194_v29 }
  0x1b   :  { %v170_v35 = vld [vmem:[#allocation0 + $0x2f] ss:$-1 sm:$0xff]  ;;  %v180_v36 = vrot.slane %v179_v33, 5  ;;  %203 = vst.msk [vmem:[#allocation2 + $0x20] sm:$0xff] %vm146_vm0, %v199_v30 }
  0x1c   :  { %v165_v37 = vld [vmem:[#allocation0 + $0x27] ss:$-1 sm:$0xff]  ;;  %v171_v38 = vrot.slane %v170_v35, 5  ;;  %209 = vst [vmem:[#allocation2 + $0x28] sm:$0xff] %v208_v31 }
  0x1d   :  { %v156_v39 = vld [vmem:[#allocation0 + $0x1f] ss:$-1 sm:$0xff]  ;;  %v166_v40 = vrot.slane %v165_v37, 5  ;;  %181 = vst [vmem:[#allocation2 + $0x18] sm:$0xff] %v180_v36 }
  0x1e   :  { %v151_v41 = vld [vmem:[#allocation0 + $0x17] ss:$-1 sm:$0xff]  ;;  %v157_v42 = vrot.slane %v156_v39, 5  ;;  %189 = vst.msk [vmem:[#allocation2 + $0x18] sm:$0xff] %vm146_vm0, %v185_v34 }
  0x1f   :  { %v142_v44 = vld [vmem:[#allocation0 + $0xf] ss:$-1 sm:$0xff]  ;;  %v152_v45 = vrot.slane %v151_v41, 5  ;;  %167 = vst [vmem:[#allocation2 + $0x10] sm:$0xff] %v166_v40 }
  0x20   :  { %v137_v47 = vld [vmem:[#allocation0 + $0x7] ss:$-1 sm:$0xff]  ;;  %v143_v48 = vrot.slane %v142_v44, 5  ;;  %175 = vst.msk [vmem:[#allocation2 + $0x10] sm:$0xff] %vm146_vm0, %v171_v38 }
  0x21   :  { %v138_v50 = vrot.slane %v137_v47, 5  ;;  %153 = vst [vmem:[#allocation2 + $0x8] sm:$0xff] %v152_v45 }
  0x22   :  { %161 = vst.msk [vmem:[#allocation2 + $0x8] sm:$0xff] %vm146_vm0, %v157_v42  ;;  %v271_v62 = vld [vmem:[#allocation2 + $0x20] sm:$0xf] }
  0x23   :  { %139 = vst [vmem:[#allocation2] sm:$0xff] %v138_v50 }
  0x24   :  { %147 = vst.msk [vmem:[#allocation2] sm:$0xff] %vm146_vm0, %v143_v48 }
  0x25   :  { %217 = vst.msk [vmem:[#allocation2 + $0x28] sm:$0xff] %vm146_vm0, %v213_v51  ;;  %v265_v60 = vld [vmem:[#allocation2 + $0x18] sm:$0xf] }
  0x26   :  { %223 = vst [vmem:[#allocation2 + $0x30] sm:$0xff] %v222_v53 }
  0x27   :  { %231 = vst.msk [vmem:[#allocation2 + $0x30] sm:$0xff] %vm146_vm0, %v227_v55  ;;  %v259_v58 = vld [vmem:[#allocation2 + $0x10] sm:$0xf] }
  0x28   :  { %237 = vst [vmem:[#allocation2 + $0x38] sm:$0xff] %v236_v56 }
  0x29   :  { %245 = vst.msk [vmem:[#allocation2 + $0x38] sm:$0xff] %vm146_vm0, %v241_v57  ;;  %v253_v59 = vld [vmem:[#allocation2 + $0x8] sm:$0xf] }
  0x2a   :  { %257 = vst [vmem:[#allocation3 + $0x4] sm:$0xf] %v253_v59 }
  0x2b   :  { %v248_v61 = vld [vmem:[#allocation2] sm:$0xf]  ;;  %263 = vst [vmem:[#allocation3 + $0x8] sm:$0xf] %v259_v58 }
  0x2c   :  { %251 = vst [vmem:[#allocation3] sm:$0xf] %v248_v61  ;;  %v277_v63 = vld [vmem:[#allocation2 + $0x28] sm:$0xf] }
  0x2d   :  { %269 = vst [vmem:[#allocation3 + $0xc] sm:$0xf] %v265_v60 }
  0x2e   :  { %275 = vst [vmem:[#allocation3 + $0x10] sm:$0xf] %v271_v62  ;;  %v283_v0 = vld [vmem:[#allocation2 + $0x30] sm:$0xf] }
  0x2f   :  { %281 = vst [vmem:[#allocation3 + $0x14] sm:$0xf] %v277_v63 }
  0x30   :  { %287 = vst [vmem:[#allocation3 + $0x18] sm:$0xf] %v283_v0  ;;  %v289_v1 = vld [vmem:[#allocation2 + $0x38] sm:$0xf] }
  0x31   :  { %293 = vst [vmem:[#allocation3 + $0x1c] sm:$0xf] %v289_v1 }
  0x33   :  { %v310_v2 = vld [vmem:[#allocation3] sm:$0xff]  }
  0x34   :  { %311 = vst [vmem:[%s448_s1] sm:$0xff] %v310_v2   ;;  %v314_v3 = vld [vmem:[#allocation3 + $0x8] sm:$0xff]  }
  0x35   :  { %315 = vst [vmem:[%s448_s1 + $0x8] sm:$0xff] %v314_v3  }
  0x36   :  { %v318_v4 = vld [vmem:[#allocation3 + $0x10] sm:$0xff]  }
  0x37   :  { %319 = vst [vmem:[%s448_s1 + $0x10] sm:$0xff] %v318_v4  }
  0x38   :  { %v322_v5 = vld [vmem:[#allocation3 + $0x18] sm:$0xff]  }
  0x39   :  { %323 = vst [vmem:[%s448_s1 + $0x18] sm:$0xff] %v322_v5  }

// kernel: spectral_transform.6
= control target key start
LH: loop header
LB: loop body
LE: loop exit
PB: predicated region body
PF: predicated region fallthrough
CT: control target
= control target key end

     0   :  { %s344_s9 = smov 0   ;;  %s346_s10 = smov 0   ;;  %s377_s0 = inlined_call_operand.vmem [shape: bf16[2,8,40], index: 0, kind: input, shape index: {}]   ;;  %s378_s1 = inlined_call_operand.vmem [shape: bf16[8,8], index: 1, kind: input, shape index: {}]   ;;  %s379_s2 = inlined_call_operand.vmem [shape: f32[2,8,40], index: 2, kind: output, shape index: {}]  }
   0x1   :  { %s348_s11 = smov 0  }
   0x2 LB: > { %s24_s12 = sadd.s32 1, %s323_s10  ;;  %p275_p0 = scmp.ge.s32.totalorder %s327_s11, 1  ;;  %s327_s11 = sphi %s348_s11, %s12_s11   ;;  %s323_s10 = sphi %s346_s10, %s381_s10   ;;  %s319_s9 = sphi %s344_s9, %s380_s9  }
   0x3   : > { %p26_p1 = scmp.ge.s32.totalorder %s24_s12, 2  ;;  %p130_p2 = scmp.lt.s32.totalorder %s327_s11, 3 }
   0x5   : > { %s383_s12 = smov (%p26_p1, %s24_s12), 0  ;;  %p131_p3 = pnand %p275_p0, %p130_p2 }
   0x6   : > { %p156_p4 = scmp.lt.s32.totalorder (!%p131_p3), %s319_s9, 1 }
   0x7   : > { %134 = sbr.rel (%p131_p3) target bundleno = 154 (0x9a), region = 28 }
   0xc   : > { %s385_s9 = smov (!%p156_p4, %s319_s9), 1  ;;  %vm177_vm0 = vcmask 1043456   ;;  %v171_v2 = vld [vmem:[%s378_s1] sm:$0xf]  ;;  %vm173_vm1 = vcmask 64512   ;;  %vm195_vm2 = vcmask 326656  }
   0xd   : > { %s276_s13 = sshll.u32 %s385_s9, 2  ;;  %s277_s19 = sshll.u32 %s385_s9, 3 }
   0xe   : > { %s162_s16 = scalar_lea.vmem %s377_s0, %s276_s13  ;;  %s169_s22 = scalar_lea.vmem %s379_s2, %s277_s19 }
   0xf   : > { %v172_v0 = vld [vmem:[%s162_s16] sm:$0xf] }
  0x10   : > { %v179_v1 = vsel %vm177_vm0, %v172_v0, 0 }
  0x11   : > { %188 = vmatpush.bf16.msra.mxu0 %v179_v1 }
  0x14   : > { %278 = vmatmul.msk.bf16.vlgmr.msra.gmra.mxu0 %vm173_vm1, %v171_v2 }
  0x91   : > { %v190_v3 = vpop.f32.mrf.mxu0 }
  0x92   : > { %v194_v4 = vmax.f32 %v190_v3, 0.0 }
  0x94   : > { %196 = vst.msk [vmem:[%s169_s22] sm:$0xff] %vm195_vm2, %v194_v4 }
  0x99   : > { %v192_v5 = vpop.f32.mrf.mxu0 }
  0x9a PF: > { %s12_s11 = sadd.s32 1, %s327_s11   ;;  %s380_s9 = smov %s323_s10 }
  0x9b   : > { %p9_p5 = scmp.ge.s32.totalorder %s12_s11, 4   ;;  %s381_s10 = smov %s383_s12 }
  0x9d   :  { %11 = sbr.rel (!%p9_p5) target bundleno = 2 (0x2), region = 58 }

// kernel: spectral_transform.5
= control target key start
LH: loop header
LB: loop body
LE: loop exit
PB: predicated region body
PF: predicated region fallthrough
CT: control target
= control target key end

     0   :  { %s398_s9 = smov 0   ;;  %s400_s10 = smov 0   ;;  %s434_s0 = inlined_call_operand.vmem [shape: bf16[2,8,144], index: 0, kind: input, shape index: {}]   ;;  %s435_s1 = inlined_call_operand.vmem [shape: bf16[8,8], index: 1, kind: input, shape index: {}]   ;;  %s436_s2 = inlined_call_operand.vmem [shape: f32[2,8,144], index: 2, kind: output, shape index: {}]  }
   0x1   :  { %s402_s11 = smov 0  }
   0x2 LB: > { %s24_s12 = sadd.s32 1, %s377_s10  ;;  %p324_p0 = scmp.ge.s32.totalorder %s381_s11, 1  ;;  %s381_s11 = sphi %s402_s11, %s12_s11   ;;  %s377_s10 = sphi %s400_s10, %s438_s10   ;;  %s373_s9 = sphi %s398_s9, %s437_s9  }
   0x3   : > { %p26_p1 = scmp.ge.s32.totalorder %s24_s12, 2  ;;  %p133_p2 = scmp.lt.s32.totalorder %s381_s11, 3 }
   0x5   : > { %s440_s12 = smov (%p26_p1, %s24_s12), 0  ;;  %p134_p3 = pnand %p324_p0, %p133_p2 }
   0x6   : > { %p164_p4 = scmp.lt.s32.totalorder (!%p134_p3), %s373_s9, 1 }
   0x7   : > { %137 = sbr.rel (%p134_p3) target bundleno = 158 (0x9e), region = 28 }
   0xc   : > { %s442_s9 = smov (!%p164_p4, %s373_s9), 1  ;;  %vm195_vm0 = vcmask 1043456   ;;  %v184_v7 = vld [vmem:[%s435_s1] sm:$0xf]  ;;  %vm191_vm1 = vcmask 64512   ;;  %vm231_vm2 = vcmask 130048  }
   0xd   : > { %s333_s13 = sshll.u32 %s442_s9, 3  ;;  %s334_s19 = sshll.u32 %s442_s9, 4 }
   0xe   : > { %s171_s16 = scalar_lea.vmem %s434_s0, %s333_s13  ;;  %s181_s22 = scalar_lea.vmem %s436_s2, %s334_s19 }
   0xf   : > { %v185_v0 = vld [vmem:[%s171_s16] sm:$0xff] }
  0x10   : > { %v187_v1 = vunpack.c.l.b16 %v185_v0  ;;  %v188_v2 = vunpack.c.h.b16 %v185_v0 }
  0x12   : > { %v189_v3 = vpack.c.b16 %v187_v1, %v187_v1  ;;  %v190_v4 = vpack.c.b16 %v188_v2, %v188_v2 }
  0x14   : > { %v197_v5 = vsel %vm195_vm0, %v189_v3, 0  ;;  %v200_v6 = vsel %vm195_vm0, %v190_v4, 0 }
  0x15   : > { %209 = vmatpush.bf16.msra.mxu0 %v197_v5  ;;  %222 = vmatpush.bf16.msra.mxu1 %v200_v6 }
  0x18   : > { %329 = vmatmul.msk.bf16.vlgmr.msra.gmra.mxu0 %vm191_vm1, %v184_v7  ;;  %330 = vmatmul.msk.bf16.vlgmr.msra.gmra.mxu1 %vm191_vm1, %v184_v7 }
  0x95   : > { %v211_v8 = vpop.f32.mrf.mxu0  ;;  %v224_v9 = vpop.f32.mrf.mxu1 }
  0x96   : > { %v228_v10 = vmax.f32 %v211_v8, 0.0  ;;  %v229_v11 = vmax.f32 %v224_v9, 0.0 }
  0x98   : > { %230 = vst [vmem:[%s181_s22] sm:$0xff] %v228_v10 }
  0x99   : > { %232 = vst.msk [vmem:[%s181_s22 + $0x8] sm:$0xff] %vm231_vm2, %v229_v11 }
  0x9d   : > { %v213_v12 = vpop.f32.mrf.mxu0  ;;  %v226_v13 = vpop.f32.mrf.mxu1 }
  0x9e PF: > { %s12_s11 = sadd.s32 1, %s381_s11   ;;  %s437_s9 = smov %s377_s10 }
  0x9f   : > { %p9_p5 = scmp.ge.s32.totalorder %s12_s11, 4   ;;  %s438_s10 = smov %s440_s12 }
  0xa1   :  { %11 = sbr.rel (!%p9_p5) target bundleno = 2 (0x2), region = 58 }

// kernel: reverse.2
= control target key start
LH: loop header
LB: loop body
LE: loop exit
PB: predicated region body
PF: predicated region fallthrough
CT: control target
= control target key end

     0   :  { %v72_v3 = vlaneseq  ;;  %v65_v6 = vld [vmem:[#allocation0 + $0x7] ss:$-1 sm:$0xff]  ;;  %v79_v8 = vld [vmem:[#allocation0 + $0x17] ss:$-1 sm:$0xff]  ;;  %s331_s0 = inlined_call_operand.vmem [shape: f32[2,4,16,7], index: 0, kind: input, shape index: {}]   ;;  %s332_s1 = inlined_call_operand.vmem [shape: f32[2,4,16,7], index: 1, kind: output, shape index: {}]  }
   0x1   :  { %v45_v0 = vld [vmem:[%s331_s0] sm:$0xff]  ;;  %v47_v1 = vld [vmem:[%s331_s0 + $0x8] sm:$0xff]  ;;  %v49_v2 = vld [vmem:[%s331_s0 + $0x10] sm:$0xff]  ;;  %v66_v12 = vrot.slane %v65_v6, 1  ;;  %v80_v13 = vrot.slane %v79_v8, 1 }
   0x2   :  { %46 = vst [vmem:[#allocation0 + $0x8] sm:$0xff] %v45_v0  ;;  %v51_v4 = vld [vmem:[%s331_s0 + $0x18] sm:$0xff]  ;;  %v53_v5 = vld [vmem:[%s331_s0 + $0x20] sm:$0xff]  ;;  %v55_v7 = vld [vmem:[%s331_s0 + $0x28] sm:$0xff]  ;;  %v73_v10 = vshrl.u32 %v72_v3, 7 }
   0x3   :  { %48 = vst [vmem:[#allocation0 + $0x18] sm:$0xff] %v47_v1  ;;  %v57_v9 = vld [vmem:[%s331_s0 + $0x30] sm:$0xff]  ;;  %v59_v11 = vld [vmem:[%s331_s0 + $0x38] sm:$0xff]  ;;  %v93_v14 = vld [vmem:[#allocation0 + $0x27] ss:$-1 sm:$0xff] }
   0x4   :  { %50 = vst [vmem:[#allocation0 + $0x28] sm:$0xff] %v49_v2  ;;  %vm74_vm0 = vcmp.lt.s32.totalorder %v73_v10, 7  ;;  %v107_v16 = vld [vmem:[#allocation0 + $0x37] ss:$-1 sm:$0xff]  ;;  %v94_v19 = vrot.slane %v93_v14, 1 }
   0x5   :  { %52 = vst [vmem:[#allocation0 + $0x38] sm:$0xff] %v51_v4  ;;  %v121_v22 = vld [vmem:[#allocation0 + $0x47] ss:$-1 sm:$0xff]  ;;  %v108_v24 = vrot.slane %v107_v16, 1  ;;  %v135_v28 = vld [vmem:[#allocation0 + $0x57] ss:$-1 sm:$0xff] }
   0x6   :  { %54 = vst [vmem:[#allocation0 + $0x48] sm:$0xff] %v53_v5  ;;  %v122_v29 = vrot.slane %v121_v22, 1  ;;  %v149_v32 = vld [vmem:[#allocation0 + $0x67] ss:$-1 sm:$0xff]  ;;  %v136_v33 = vrot.slane %v135_v28, 1 }
   0x7   :  { %56 = vst [vmem:[#allocation0 + $0x58] sm:$0xff] %v55_v7  ;;  %v163_v36 = vld [vmem:[#allocation0 + $0x77] ss:$-1 sm:$0xff]  ;;  %v150_v37 = vrot.slane %v149_v32, 1 }
   0x8   :  { %58 = vst [vmem:[#allocation0 + $0x68] sm:$0xff] %v57_v9  ;;  %v164_v40 = vrot.slane %v163_v36, 1 }
   0x9   :  { %60 = vst [vmem:[#allocation0 + $0x78] sm:$0xff] %v59_v11  ;;  %v70_v15 = vld [vmem:[#allocation0 + $0xf] ss:$-1 sm:$0xff] }
   0xa   :  { %67 = vst [vmem:[#allocation1] sm:$0xff] %v66_v12  ;;  %v71_v17 = vrot.slane %v70_v15, 1  ;;  %v84_v18 = vld [vmem:[#allocation0 + $0x1f] ss:$-1 sm:$0xff] }
   0xb   :  { %81 = vst [vmem:[#allocation1 + $0x8] sm:$0xff] %v80_v13  ;;  %v85_v20 = vrot.slane %v84_v18, 1  ;;  %v98_v21 = vld [vmem:[#allocation0 + $0x2f] ss:$-1 sm:$0xff] }
   0xc   :  { %75 = vst.msk [vmem:[#allocation1] sm:$0xff] %vm74_vm0, %v71_v17  ;;  %v99_v23 = vrot.slane %v98_v21, 1  ;;  %v112_v25 = vld [vmem:[#allocation0 + $0x3f] ss:$-1 sm:$0xff] }
   0xd   :  { %89 = vst.msk [vmem:[#allocation1 + $0x8] sm:$0xff] %vm74_vm0, %v85_v20  ;;  %v113_v26 = vrot.slane %v112_v25, 1  ;;  %v126_v27 = vld [vmem:[#allocation0 + $0x4f] ss:$-1 sm:$0xff] }
   0xe   :  { %95 = vst [vmem:[#allocation1 + $0x10] sm:$0xff] %v94_v19  ;;  %v140_v30 = vld [vmem:[#allocation0 + $0x5f] ss:$-1 sm:$0xff]  ;;  %v127_v31 = vrot.slane %v126_v27, 1 }
   0xf   :  { %103 = vst.msk [vmem:[#allocation1 + $0x10] sm:$0xff] %vm74_vm0, %v99_v23  ;;  %v154_v34 = vld [vmem:[#allocation0 + $0x6f] ss:$-1 sm:$0xff]  ;;  %v141_v35 = vrot.slane %v140_v30, 1 }
  0x10   :  { %109 = vst [vmem:[#allocation1 + $0x18] sm:$0xff] %v108_v24  ;;  %v168_v38 = vld [vmem:[#allocation0 + $0x7f] ss:$-1 sm:$0xff]  ;;  %v155_v39 = vrot.slane %v154_v34, 1 }
  0x11   :  { %117 = vst.msk [vmem:[#allocation1 + $0x18] sm:$0xff] %vm74_vm0, %v113_v26  ;;  %v169_v41 = vrot.slane %v168_v38, 1 }
  0x12   :  { %123 = vst [vmem:[#allocation1 + $0x20] sm:$0xff] %v122_v29 }
  0x13   :  { %131 = vst.msk [vmem:[#allocation1 + $0x20] sm:$0xff] %vm74_vm0, %v127_v31  ;;  %v216_v42 = vld [vmem:[#allocation1] sm:$0xff] }
  0x14   :  { %137 = vst [vmem:[#allocation1 + $0x28] sm:$0xff] %v136_v33  ;;  %v218_v43 = vld [vmem:[#allocation1 + $0x8] sm:$0xff] }
  0x15   :  { %145 = vst.msk [vmem:[#allocation1 + $0x28] sm:$0xff] %vm74_vm0, %v141_v35 }
  0x16   :  { %151 = vst [vmem:[#allocation1 + $0x30] sm:$0xff] %v150_v37  ;;  %v220_v44 = vld [vmem:[#allocation1 + $0x10] sm:$0xff] }
  0x17   :  { %159 = vst.msk [vmem:[#allocation1 + $0x30] sm:$0xff] %vm74_vm0, %v155_v39 }
  0x18   :  { %165 = vst [vmem:[#allocation1 + $0x38] sm:$0xff] %v164_v40  ;;  %v222_v45 = vld [vmem:[#allocation1 + $0x18] sm:$0xff] }
  0x19   :  { %173 = vst.msk [vmem:[#allocation1 + $0x38] sm:$0xff] %vm74_vm0, %v169_v41 }
  0x1a   :  { %217 = vst [vmem:[%s332_s1] sm:$0xff] %v216_v42  ;;  %v224_v46 = vld [vmem:[#allocation1 + $0x20] sm:$0xff] }
  0x1b   :  { %219 = vst [vmem:[%s332_s1 + $0x8] sm:$0xff] %v218_v43 }
  0x1c   :  { %221 = vst [vmem:[%s332_s1 + $0x10] sm:$0xff] %v220_v44  ;;  %v226_v47 = vld [vmem:[#allocation1 + $0x28] sm:$0xff] }
  0x1d   :  { %223 = vst [vmem:[%s332_s1 + $0x18] sm:$0xff] %v222_v45 }
  0x1e   :  { %225 = vst [vmem:[%s332_s1 + $0x20] sm:$0xff] %v224_v46  ;;  %v228_v48 = vld [vmem:[#allocation1 + $0x30] sm:$0xff] }
  0x1f   :  { %227 = vst [vmem:[%s332_s1 + $0x28] sm:$0xff] %v226_v47 }
  0x20   :  { %229 = vst [vmem:[%s332_s1 + $0x30] sm:$0xff] %v228_v48  ;;  %v230_v49 = vld [vmem:[#allocation1 + $0x38] sm:$0xff] }
  0x21   :  { %231 = vst [vmem:[%s332_s1 + $0x38] sm:$0xff] %v230_v49 }

// kernel: spectral_transform.7
= control target key start
LH: loop header
LB: loop body
LE: loop exit
PB: predicated region body
PF: predicated region fallthrough
CT: control target
= control target key end

     0   :  { %s546_s15 = smov 0   ;;  %s548_s16 = smov 0   ;;  %s606_s0 = inlined_call_operand.vmem [shape: bf16[2,4,256], index: 0, kind: input, shape index: {}]   ;;  %s607_s1 = inlined_call_operand.vmem [shape: bf16[2,4,256], index: 1, kind: input, shape index: {}]   ;;  %s608_s2 = inlined_call_operand.vmem [shape: bf16[2,4,128], index: 2, kind: input, shape index: {}]   ;;  %s609_s3 = inlined_call_operand.vmem [shape: bf16[8,4], index: 3, kind: input, shape index: {}]   ;;  %s610_s4 = inlined_call_operand.vmem [shape: f32[2,8,256], index: 4, kind: output, shape index: {}]  }
   0x1   :  { %s550_s17 = smov 0   ;;  %s552_s18 = smov 0  }
   0x2   :  { %s554_s19 = smov 0  }
   0x3 LB: > { %s23_s20 = sadd.s32 1, %s511_s17  ;;  %s26_s21 = sadd.s32 1, %s515_s18  ;;  %s519_s19 = sphi %s554_s19, %s14_s19   ;;  %s515_s18 = sphi %s552_s18, %s614_s18   ;;  %s511_s17 = sphi %s550_s17, %s613_s17   ;;  %s507_s16 = sphi %s548_s16, %s612_s16   ;;  %s503_s15 = sphi %s546_s15, %s611_s15  }
   0x4   : > { %p24_p0 = scmp.ge.s32.totalorder %s23_s20, 2  ;;  %p430_p1 = scmp.ge.s32.totalorder %s519_s19, 1 }
   0x5   : > { %p205_p2 = scmp.lt.s32.totalorder %s519_s19, 5 }
   0x6   : > { %s616_s20 = smov (%p24_p0, %s23_s20), 0  ;;  %s618_s21 = smov (!%p24_p0, %s26_s21), %s515_s18 }
   0x7   : > { %p206_p3 = pnand %p430_p1, %p205_p2  ;;  %p28_p4 = scmp.ge.s32.totalorder %s618_s21, 2 }
   0x8   : > { %p249_p5 = scmp.lt.s32.totalorder (!%p206_p3), %s507_s16, 1  ;;  %p251_p6 = scmp.lt.s32.totalorder (!%p206_p3), %s503_s15, 1 }
   0x9   : > { %s620_s21 = smov (%p28_p4, %s618_s21), 0  ;;  %209 = sbr.rel (%p206_p3) target bundleno = 167 (0xa7), region = 36 }
   0xe   : > { %s622_s16 = smov (!%p249_p5, %s507_s16), 1  ;;  %s624_s15 = smov (!%p251_p6, %s503_s15), 1  ;;  %vm292_vm0 = vcmask 1041408   ;;  %v286_v10 = vld [vmem:[%s609_s3] sm:$0xf]  ;;  %vm288_vm1 = vcmask 31744  }
   0xf   : > { %s431_s22 = sshll.u32 %s622_s16, 1 }
  0x10   : > { %s254_s23 = sadd.s32 %s431_s22, %s624_s15  ;;  %s268_s26 = scalar_lea.vmem %s608_s2, %s431_s22 }
  0x11   : > { %s432_s27 = sshll.u32 %s254_s23, 1  ;;  %v283_v0 = vld [vmem:[%s268_s26] sm:$0x3]  ;;  %s437_s10 = sshll.u32 %s254_s23, 3 }
  0x12   : > { %s256_s30 = scalar_lea.vmem %s606_s0, %s432_s27  ;;  %s264_s7 = scalar_lea.vmem %s607_s1, %s432_s27  ;;  %v284_v5 = vunpack.c.l.bf16 %v283_v0 }
  0x13   : > { %v278_v1 = vld [vmem:[%s256_s30] sm:$0x3]  ;;  %s276_s13 = scalar_lea.vmem %s610_s4, %s437_s10 }
  0x14   : > { %v280_v2 = vld [vmem:[%s264_s7] sm:$0x3]  ;;  %v279_v3 = vunpack.c.l.bf16 %v278_v1 }
  0x15   : > { %v281_v4 = vunpack.c.l.bf16 %v280_v2 }
  0x17   : > { %v282_v6 = vadd.f32 %v281_v4, %v279_v3 }
  0x19   : > { %v285_v7 = vadd.f32 %v284_v5, %v282_v6 }
  0x1b   : > { %v287_v8 = vpack.c.bf16 %v285_v7, %v285_v7 }
  0x1d   : > { %v294_v9 = vsel %vm292_vm0, %v287_v8, 0 }
  0x1e   : > { %303 = vmatpush.bf16.msra.mxu0 %v294_v9 }
  0x21   : > { %438 = vmatmul.msk.bf16.vlgmr.msra.gmra.mxu0 %vm288_vm1, %v286_v10 }
  0x9e   : > { %v305_v11 = vpop.f32.mrf.mxu0 }
  0x9f   : > { %309 = vst [vmem:[%s276_s13] sm:$0xff] %v305_v11 }
  0xa6   : > { %v307_v12 = vpop.f32.mrf.mxu0 }
  0xa7 PF: > { %s14_s19 = sadd.s32 1, %s519_s19   ;;  %s611_s15 = smov %s511_s17 }
  0xa8   : > { %p11_p7 = scmp.ge.s32.totalorder %s14_s19, 6   ;;  %s612_s16 = smov %s515_s18 }
  0xa9   : > { %s613_s17 = smov %s616_s20  ;;  %s614_s18 = smov %s620_s21 }
  0xaa   :  { %13 = sbr.rel (!%p11_p7) target bundleno = 3 (0x3), region = 72 }

</bundles_post_ra>
